<compile_context>
chip_gen: v6e
topology: v6e:2x2x1
jax: 0.10.0
libtpu: 0.0.40
codegen_flags: <defaults>
</compile_context>

<pallas_src>
import functools

import jax
import jax.numpy as jnp
from jax import lax
from jax.experimental import pallas as pl
from jax.experimental.pallas import tpu as pltpu


def bow_block_kernel(q_ref, kv_ref, wfc_ref, bfc_ref, wproj_ref, bproj_ref,
                     o_ref, m_sc, l_sc, acc_sc, *, n_embd, tq, tk):
    # q_ref: (tq, C) query tile, kv_ref: (tk, C) key/value tile (same tensor x).
    # Weights are bf16, biases f32. Scratch m/l/acc persist across the kv axis.
    qi = pl.program_id(1)
    ki = pl.program_id(2)
    nk = pl.num_programs(2)

    q_start = qi * tq
    k_start = ki * tk

    @pl.when(ki == 0)
    def _init():
        m_sc[...] = jnp.full_like(m_sc, -jnp.inf)
        l_sc[...] = jnp.zeros_like(l_sc)
        acc_sc[...] = jnp.zeros_like(acc_sc)

    # Causal block skip: every key index in this kv tile is strictly greater than every
    # query index -> nothing visible, skip all MXU / exp work for this block.
    fully_masked = k_start > q_start + (tq - 1)

    @pl.when(jnp.logical_not(fully_masked))
    def _compute():
        scale = 1.0 / jnp.sqrt(jnp.float32(n_embd))          # scale uses the REAL C
        q = (q_ref[...].astype(jnp.float32) * scale).astype(jnp.bfloat16)
        k = kv_ref[...].astype(jnp.bfloat16)
        # Contract the last dim of both operands (A @ B^T without materializing B^T).
        s = lax.dot_general(q, k, (((1,), (1,)), ((), ())),
                            preferred_element_type=jnp.float32)      # (tq, tk) f32

        # Blocks entirely at/below the diagonal need no mask at all.
        fully_visible = (k_start + (tk - 1)) <= q_start
        row = q_start + lax.broadcasted_iota(jnp.int32, (tq, tk), 0)
        col = k_start + lax.broadcasted_iota(jnp.int32, (tq, tk), 1)
        s = jnp.where(jnp.logical_or(fully_visible, col <= row), s,
                      jnp.float32(-1e30))                            # finite, NaN-safe

        # Online softmax update (unnormalized probabilities feed the PV matmul).
        m_prev = m_sc[...]
        m_new = jnp.maximum(m_prev, jnp.max(s, axis=-1, keepdims=True))
        alpha = jnp.exp(m_prev - m_new)
        p = jnp.exp(s - m_new)
        l_sc[...] = alpha * l_sc[...] + jnp.sum(p, axis=-1, keepdims=True)
        acc_sc[...] = alpha * acc_sc[...] + jnp.dot(
            p.astype(jnp.bfloat16), kv_ref[...].astype(jnp.bfloat16),
            preferred_element_type=jnp.float32)
        m_sc[...] = m_new

    @pl.when(ki == nk - 1)
    def _finalize():
        x_q = q_ref[...].astype(jnp.float32)                          # (tq, C)
        l = l_sc[...]
        inv_l = pl.reciprocal(l, approx=True)                         # EUP slot
        inv_l = inv_l * (2.0 - l * inv_l)                             # Newton -> ~f32 exact
        x1 = x_q + acc_sc[...] * inv_l                                # residual 1

        # MLP: c_proj(tanh(c_fc(x1))), bf16 operands, f32 accumulation + f32 bias adds.
        h = jnp.tanh(jnp.dot(x1.astype(jnp.bfloat16), wfc_ref[...],
                             preferred_element_type=jnp.float32) + bfc_ref[...])
        proj = jnp.dot(h.astype(jnp.bfloat16), wproj_ref[...],
                       preferred_element_type=jnp.float32) + bproj_ref[...]
        o_ref[...] = (x1 + proj).astype(o_ref.dtype)                  # residual 2


def bow_block(x, w_fc, b_fc, w_proj, b_proj, *, tile_pref=256):
    B, T, C = x.shape
    H = w_fc.shape[1]

    # Tile the sequence axis; fall back to a single tile when T is small / not divisible.
    def pick(pref):
        return pref if (pref <= T and T % pref == 0) else T
    tq = pick(tile_pref)
    tk = pick(tile_pref)
    nq = T // tq
    nk = T // tk

    # Weights as bf16 (halves weight VMEM/HBM traffic); biases stay f32 for the f32 adds.
    wfc = w_fc.astype(jnp.bfloat16)
    wproj = w_proj.astype(jnp.bfloat16)
    bfc = b_fc.reshape(1, H).astype(jnp.float32)
    bproj = b_proj.reshape(1, C).astype(jnp.float32)

    flops = 4 * B * T * T * C + 4 * B * T * C * H
    transcendentals = B * T * T // 2 + B * T * H + B * T
    bytes_accessed = (4 * B * T * C * (1 + nq)        # q read + kv re-read per q tile
                      + 4 * B * T * C                 # output write
                      + 2 * (C * H + H * C) + 4 * (H + C))

    kernel = functools.partial(bow_block_kernel, n_embd=C, tq=tq, tk=tk)

    return pl.pallas_call(
        kernel,
        out_shape=jax.ShapeDtypeStruct((B, T, C), x.dtype),
        grid_spec=pltpu.PrefetchScalarGridSpec(
            num_scalar_prefetch=0,
            grid=(B, nq, nk),
            in_specs=[
                pl.BlockSpec((None, tq, C), lambda b, qi, ki: (b, qi, 0)),  # q tile
                pl.BlockSpec((None, tk, C), lambda b, qi, ki: (b, ki, 0)),  # k/v tile
                pl.BlockSpec((C, H), lambda b, qi, ki: (0, 0)),   # weights stay resident
                pl.BlockSpec((1, H), lambda b, qi, ki: (0, 0)),
                pl.BlockSpec((H, C), lambda b, qi, ki: (0, 0)),
                pl.BlockSpec((1, C), lambda b, qi, ki: (0, 0)),
            ],
            out_specs=pl.BlockSpec((None, tq, C), lambda b, qi, ki: (b, qi, 0)),
            scratch_shapes=[
                pltpu.VMEM((tq, 1), jnp.float32),   # m (running max)
                pltpu.VMEM((tq, 1), jnp.float32),   # l (running denom)
                pltpu.VMEM((tq, C), jnp.float32),   # acc (unnormalized output)
            ]),
        compiler_params=pltpu.CompilerParams(
            dimension_semantics=("parallel", "parallel", "arbitrary"),
            vmem_limit_bytes=32 * 1024 * 1024),
        cost_estimate=pl.CostEstimate(
            flops=flops,
            transcendentals=transcendentals,
            bytes_accessed=bytes_accessed),
    )(x, x, wfc, bfc, wproj, bproj)


def bow_block_ref(x, w_fc, b_fc, w_proj, b_proj):
    # Pure-JAX f32 reference for verification.
    B, T, C = x.shape
    scale = 1.0 / jnp.sqrt(jnp.float32(C))
    s = jnp.einsum("btc,bsc->bts", x, x) * scale
    mask = jnp.tril(jnp.ones((T, T), bool))
    s = jnp.where(mask[None], s, -jnp.inf)
    p = jax.nn.softmax(s, axis=-1)
    attn = jnp.einsum("bts,bsc->btc", p, x)
    x1 = x + attn
    h = jnp.tanh(x1 @ w_fc + b_fc)
    return x1 + (h @ w_proj + b_proj)


if __name__ == "__main__":
    # Module hyperparameters (synthetic, deterministic init).
    n_embd, n_embd2 = 32, 64
    B, T = 2, 8

    key = jax.random.PRNGKey(0)
    kx, k1, k2, k3, k4 = jax.random.split(key, 5)

    x = jax.random.normal(kx, (B, T, n_embd), dtype=jnp.float32)

    # PyTorch nn.Linear default init: U(-1/sqrt(fan_in), 1/sqrt(fan_in)).
    bnd1 = 1.0 / jnp.sqrt(jnp.float32(n_embd))
    bnd2 = 1.0 / jnp.sqrt(jnp.float32(n_embd2))
    w_fc = jax.random.uniform(k1, (n_embd, n_embd2), jnp.float32, -bnd1, bnd1)
    b_fc = jax.random.uniform(k2, (1, n_embd2), jnp.float32, -bnd1, bnd1)
    w_proj = jax.random.uniform(k3, (n_embd2, n_embd), jnp.float32, -bnd2, bnd2)
    b_proj = jax.random.uniform(k4, (1, n_embd), jnp.float32, -bnd2, bnd2)

    out = bow_block(x, w_fc, b_fc, w_proj, b_proj)
    out = jax.block_until_ready(out)

    ref = bow_block_ref(x, w_fc, b_fc, w_proj, b_proj)
    assert out.shape == (B, T, n_embd)
    # Tolerance reflects bf16 MXU operands (f32 accumulation): ~2^-9 relative per
    # operand plus the EUP approx-reciprocal (+ Newton step) in the softmax denom.
    assert jnp.allclose(out, ref, atol=5e-2, rtol=5e-2), float(
        jnp.max(jnp.abs(out - ref)))

    print("KERNEL_OK")
</pallas_src>

<mosaic_0001>
module attributes {stable_mosaic.version = 11 : i64} {
  func.func @bow_block_kernel(%arg0: i32, %arg1: i32, %arg2: i32, %arg3: memref<1x8x32xf32, #tpu.memory_space<vmem>>, %arg4: memref<1x8x32xf32, #tpu.memory_space<vmem>>, %arg5: memref<32x64xbf16, #tpu.memory_space<vmem>>, %arg6: memref<1x64xf32, #tpu.memory_space<vmem>>, %arg7: memref<64x32xbf16, #tpu.memory_space<vmem>>, %arg8: memref<1x32xf32, #tpu.memory_space<vmem>>, %arg9: memref<1x8x32xf32, #tpu.memory_space<vmem>>, %arg10: memref<8x1xf32, #tpu.memory_space<vmem>>, %arg11: memref<8x1xf32, #tpu.memory_space<vmem>>, %arg12: memref<8x32xf32, #tpu.memory_space<vmem>>) attributes {dimension_semantics = [#tpu.dimension_semantics<parallel>, #tpu.dimension_semantics<parallel>, #tpu.dimension_semantics<arbitrary>], iteration_bounds = array<i64: 2, 1, 1>, scalar_prefetch = 0 : i64, scratch_operands = 3 : i64, tpu.core_type = #tpu.core_type<tc>, window_params = [{transform_indices = @transform_0, window_bounds = array<i64: 1, 8, 32>}, {transform_indices = @transform_1, window_bounds = array<i64: 1, 8, 32>}, {pipeline_mode = #tpu.pipeline_mode<synchronous>, transform_indices = @transform_2, window_bounds = array<i64: 32, 64>}, {pipeline_mode = #tpu.pipeline_mode<synchronous>, transform_indices = @transform_3, window_bounds = array<i64: 1, 64>}, {pipeline_mode = #tpu.pipeline_mode<synchronous>, transform_indices = @transform_4, window_bounds = array<i64: 64, 32>}, {pipeline_mode = #tpu.pipeline_mode<synchronous>, transform_indices = @transform_5, window_bounds = array<i64: 1, 32>}, {transform_indices = @transform_6, window_bounds = array<i64: 1, 8, 32>}]} {
    %c8_i32 = arith.constant 8 : i32
    %0 = arith.muli %arg1, %c8_i32 : i32
    %c8_i32_0 = arith.constant 8 : i32
    %1 = arith.muli %arg2, %c8_i32_0 : i32
    %c0_i32 = arith.constant 0 : i32
    %2 = arith.cmpi eq, %arg2, %c0_i32 : i32
    %3 = arith.extui %2 : i1 to i32
    %c0_i32_1 = arith.constant 0 : i32
    %4 = arith.cmpi ne, %3, %c0_i32_1 : i32
    scf.if %4 {
      %cst = arith.constant 0xFF800000 : f32
      %13 = vector.broadcast %cst : f32 to vector<8x1xf32>
      %c0 = arith.constant 0 : index
      %c0_5 = arith.constant 0 : index
      %14 = vector.load %arg10[%c0, %c0_5] : memref<8x1xf32, #tpu.memory_space<vmem>>, vector<8x1xf32>
      tpu.vector_store %arg10[%c0, %c0_5], %13 {strides = array<i32>} : memref<8x1xf32, #tpu.memory_space<vmem>>, vector<8x1xf32>,
      %cst_6 = arith.constant 0.000000e+00 : f32
      %15 = vector.broadcast %cst_6 : f32 to vector<8x1xf32>
      %c0_7 = arith.constant 0 : index
      %c0_8 = arith.constant 0 : index
      %16 = vector.load %arg11[%c0_7, %c0_8] : memref<8x1xf32, #tpu.memory_space<vmem>>, vector<8x1xf32>
      tpu.vector_store %arg11[%c0_7, %c0_8], %15 {strides = array<i32>} : memref<8x1xf32, #tpu.memory_space<vmem>>, vector<8x1xf32>,
      %cst_9 = arith.constant 0.000000e+00 : f32
      %17 = vector.broadcast %cst_9 : f32 to vector<8x32xf32>
      %c0_10 = arith.constant 0 : index
      %c0_11 = arith.constant 0 : index
      %18 = vector.load %arg12[%c0_10, %c0_11] : memref<8x32xf32, #tpu.memory_space<vmem>>, vector<8x32xf32>
      tpu.vector_store %arg12[%c0_10, %c0_11], %17 {strides = array<i32>} : memref<8x32xf32, #tpu.memory_space<vmem>>, vector<8x32xf32>,
    } else {
    }
    %c7_i32 = arith.constant 7 : i32
    %5 = arith.addi %0, %c7_i32 : i32
    %6 = arith.cmpi sgt, %1, %5 : i32
    %true = arith.constant true
    %7 = arith.xori %6, %true : i1
    %8 = arith.extui %7 : i1 to i32
    %c0_i32_2 = arith.constant 0 : i32
    %9 = arith.cmpi ne, %8, %c0_i32_2 : i32
    scf.if %9 {
      %cst = arith.constant 3.200000e+01 : f32
      %13 = math.sqrt %cst : f32
      %cst_5 = arith.constant 1.000000e+00 : f32
      %14 = arith.divf %cst_5, %13 : f32
      %c0 = arith.constant 0 : index
      %c0_6 = arith.constant 0 : index
      %c0_7 = arith.constant 0 : index
      %15 = vector.load %arg3[%c0, %c0_6, %c0_7] : memref<1x8x32xf32, #tpu.memory_space<vmem>>, vector<1x8x32xf32>
      %16 = vector.shape_cast %15 : vector<1x8x32xf32> to vector<8x32xf32>
      %17 = vector.broadcast %14 : f32 to vector<8x32xf32>
      %18 = arith.mulf %16, %17 : vector<8x32xf32>
      %19 = arith.truncf %18 : vector<8x32xf32> to vector<8x32xbf16>
      %c0_8 = arith.constant 0 : index
      %c0_9 = arith.constant 0 : index
      %c0_10 = arith.constant 0 : index
      %20 = vector.load %arg4[%c0_8, %c0_9, %c0_10] : memref<1x8x32xf32, #tpu.memory_space<vmem>>, vector<1x8x32xf32>
      %21 = vector.shape_cast %20 : vector<1x8x32xf32> to vector<8x32xf32>
      %22 = arith.truncf %21 : vector<8x32xf32> to vector<8x32xbf16>
      %cst_11 = arith.constant dense<0.000000e+00> : vector<8x8xf32>
      %23 = tpu.matmul %19, %22, %cst_11 {dimension_numbers = #tpu.dot_dimension_numbers<[1], [1], [0], [0], [0, 0, 1, 0], [], []>} : vector<8x32xbf16>, vector<8x32xbf16>, vector<8x8xf32> -> vector<8x8xf32>
      %c7_i32_12 = arith.constant 7 : i32
      %24 = arith.addi %1, %c7_i32_12 : i32
      %25 = arith.cmpi sle, %24, %0 : i32
      %26 = tpu.iota {dimensions = array<i32: 0>} : vector<8x8xi32>
      %27 = vector.broadcast %0 : i32 to vector<8x8xi32>
      %28 = arith.addi %27, %26 : vector<8x8xi32>
      %29 = tpu.iota {dimensions = array<i32: 1>} : vector<8x8xi32>
      %30 = vector.broadcast %1 : i32 to vector<8x8xi32>
      %31 = arith.addi %30, %29 : vector<8x8xi32>
      %32 = arith.cmpi sle, %31, %28 : vector<8x8xi32>
      %33 = vector.broadcast %25 : i1 to vector<8x8xi1>
      %34 = arith.ori %33, %32 : vector<8x8xi1>
      %cst_13 = arith.constant -1.000000e+30 : f32
      %35 = vector.broadcast %cst_13 : f32 to vector<8x8xf32>
      %36 = arith.select %34, %23, %35 : vector<8x8xi1>, vector<8x8xf32>
      %c0_14 = arith.constant 0 : index
      %c0_15 = arith.constant 0 : index
      %37 = vector.load %arg10[%c0_14, %c0_15] : memref<8x1xf32, #tpu.memory_space<vmem>>, vector<8x1xf32>
      %cst_16 = arith.constant dense<0xFF800000> : vector<8xf32>
      %38 = vector.multi_reduction <maximumf>, %36, %cst_16 [1] : vector<8x8xf32> to vector<8xf32>
      %39 = vector.shape_cast %38 : vector<8xf32> to vector<8x1xf32>
      %40 = arith.maximumf %37, %39 : vector<8x1xf32>
      %41 = arith.subf %37, %40 : vector<8x1xf32>
      %42 = math.exp %41 : vector<8x1xf32>
      %43 = vector.broadcast %40 : vector<8x1xf32> to vector<8x8xf32>
      %44 = arith.subf %36, %43 : vector<8x8xf32>
      %45 = math.exp %44 : vector<8x8xf32>
      %c0_17 = arith.constant 0 : index
      %c0_18 = arith.constant 0 : index
      %46 = vector.load %arg11[%c0_17, %c0_18] : memref<8x1xf32, #tpu.memory_space<vmem>>, vector<8x1xf32>
      %47 = arith.mulf %42, %46 : vector<8x1xf32>
      %cst_19 = arith.constant dense<0.000000e+00> : vector<8xf32>
      %48 = vector.multi_reduction <add>, %45, %cst_19 [1] : vector<8x8xf32> to vector<8xf32>
      %49 = vector.shape_cast %48 : vector<8xf32> to vector<8x1xf32>
      %50 = arith.addf %47, %49 : vector<8x1xf32>
      %c0_20 = arith.constant 0 : index
      %c0_21 = arith.constant 0 : index
      %51 = vector.load %arg11[%c0_20, %c0_21] : memref<8x1xf32, #tpu.memory_space<vmem>>, vector<8x1xf32>
      tpu.vector_store %arg11[%c0_20, %c0_21], %50 {strides = array<i32>} : memref<8x1xf32, #tpu.memory_space<vmem>>, vector<8x1xf32>,
      %c0_22 = arith.constant 0 : index
      %c0_23 = arith.constant 0 : index
      %52 = vector.load %arg12[%c0_22, %c0_23] : memref<8x32xf32, #tpu.memory_space<vmem>>, vector<8x32xf32>
      %53 = vector.broadcast %42 : vector<8x1xf32> to vector<8x32xf32>
      %54 = arith.mulf %53, %52 : vector<8x32xf32>
      %55 = arith.truncf %45 : vector<8x8xf32> to vector<8x8xbf16>
      %c0_24 = arith.constant 0 : index
      %c0_25 = arith.constant 0 : index
      %c0_26 = arith.constant 0 : index
      %56 = vector.load %arg4[%c0_24, %c0_25, %c0_26] : memref<1x8x32xf32, #tpu.memory_space<vmem>>, vector<1x8x32xf32>
      %57 = vector.shape_cast %56 : vector<1x8x32xf32> to vector<8x32xf32>
      %58 = arith.truncf %57 : vector<8x32xf32> to vector<8x32xbf16>
      %cst_27 = arith.constant dense<0.000000e+00> : vector<8x32xf32>
      %59 = tpu.matmul %55, %58, %cst_27 {dimension_numbers = #tpu.dot_dimension_numbers<[1], [0], [0], [1], [0, 0, 1, 1], [], []>} : vector<8x8xbf16>, vector<8x32xbf16>, vector<8x32xf32> -> vector<8x32xf32>
      %60 = arith.addf %54, %59 : vector<8x32xf32>
      %c0_28 = arith.constant 0 : index
      %c0_29 = arith.constant 0 : index
      %61 = vector.load %arg12[%c0_28, %c0_29] : memref<8x32xf32, #tpu.memory_space<vmem>>, vector<8x32xf32>
      tpu.vector_store %arg12[%c0_28, %c0_29], %60 {strides = array<i32>} : memref<8x32xf32, #tpu.memory_space<vmem>>, vector<8x32xf32>,
      %c0_30 = arith.constant 0 : index
      %c0_31 = arith.constant 0 : index
      %62 = vector.load %arg10[%c0_30, %c0_31] : memref<8x1xf32, #tpu.memory_space<vmem>>, vector<8x1xf32>
      tpu.vector_store %arg10[%c0_30, %c0_31], %40 {strides = array<i32>} : memref<8x1xf32, #tpu.memory_space<vmem>>, vector<8x1xf32>,
    } else {
    }
    %c0_i32_3 = arith.constant 0 : i32
    %10 = arith.cmpi eq, %arg2, %c0_i32_3 : i32
    %11 = arith.extui %10 : i1 to i32
    %c0_i32_4 = arith.constant 0 : i32
    %12 = arith.cmpi ne, %11, %c0_i32_4 : i32
    scf.if %12 {
      %c0 = arith.constant 0 : index
      %c0_5 = arith.constant 0 : index
      %c0_6 = arith.constant 0 : index
      %13 = vector.load %arg3[%c0, %c0_5, %c0_6] : memref<1x8x32xf32, #tpu.memory_space<vmem>>, vector<1x8x32xf32>
      %14 = vector.shape_cast %13 : vector<1x8x32xf32> to vector<8x32xf32>
      %c0_7 = arith.constant 0 : index
      %c0_8 = arith.constant 0 : index
      %15 = vector.load %arg11[%c0_7, %c0_8] : memref<8x1xf32, #tpu.memory_space<vmem>>, vector<8x1xf32>
      %16 = tpu.reciprocal %15 {approx = true} : vector<8x1xf32> -> vector<8x1xf32>
      %17 = arith.mulf %15, %16 : vector<8x1xf32>
      %cst = arith.constant 2.000000e+00 : f32
      %18 = vector.broadcast %cst : f32 to vector<8x1xf32>
      %19 = arith.subf %18, %17 : vector<8x1xf32>
      %20 = arith.mulf %16, %19 : vector<8x1xf32>
      %c0_9 = arith.constant 0 : index
      %c0_10 = arith.constant 0 : index
      %21 = vector.load %arg12[%c0_9, %c0_10] : memref<8x32xf32, #tpu.memory_space<vmem>>, vector<8x32xf32>
      %22 = vector.broadcast %20 : vector<8x1xf32> to vector<8x32xf32>
      %23 = arith.mulf %21, %22 : vector<8x32xf32>
      %24 = arith.addf %14, %23 : vector<8x32xf32>
      %25 = arith.truncf %24 : vector<8x32xf32> to vector<8x32xbf16>
      %c0_11 = arith.constant 0 : index
      %c0_12 = arith.constant 0 : index
      %26 = vector.load %arg5[%c0_11, %c0_12] : memref<32x64xbf16, #tpu.memory_space<vmem>>, vector<32x64xbf16>
      %cst_13 = arith.constant dense<0.000000e+00> : vector<8x64xf32>
      %27 = tpu.matmul %25, %26, %cst_13 {dimension_numbers = #tpu.dot_dimension_numbers<[1], [0], [0], [1], [0, 0, 1, 1], [], []>} : vector<8x32xbf16>, vector<32x64xbf16>, vector<8x64xf32> -> vector<8x64xf32>
      %c0_14 = arith.constant 0 : index
      %c0_15 = arith.constant 0 : index
      %28 = vector.load %arg6[%c0_14, %c0_15] : memref<1x64xf32, #tpu.memory_space<vmem>>, vector<1x64xf32>
      %29 = vector.broadcast %28 : vector<1x64xf32> to vector<8x64xf32>
      %30 = arith.addf %27, %29 : vector<8x64xf32>
      %31 = math.tanh %30 : vector<8x64xf32>
      %32 = arith.truncf %31 : vector<8x64xf32> to vector<8x64xbf16>
      %c0_16 = arith.constant 0 : index
      %c0_17 = arith.constant 0 : index
      %33 = vector.load %arg7[%c0_16, %c0_17] : memref<64x32xbf16, #tpu.memory_space<vmem>>, vector<64x32xbf16>
      %cst_18 = arith.constant dense<0.000000e+00> : vector<8x32xf32>
      %34 = tpu.matmul %32, %33, %cst_18 {dimension_numbers = #tpu.dot_dimension_numbers<[1], [0], [0], [1], [0, 0, 1, 1], [], []>} : vector<8x64xbf16>, vector<64x32xbf16>, vector<8x32xf32> -> vector<8x32xf32>
      %c0_19 = arith.constant 0 : index
      %c0_20 = arith.constant 0 : index
      %35 = vector.load %arg8[%c0_19, %c0_20] : memref<1x32xf32, #tpu.memory_space<vmem>>, vector<1x32xf32>
      %36 = vector.broadcast %35 : vector<1x32xf32> to vector<8x32xf32>
      %37 = arith.addf %34, %36 : vector<8x32xf32>
      %38 = arith.addf %24, %37 : vector<8x32xf32>
      %c0_21 = arith.constant 0 : index
      %c0_22 = arith.constant 0 : index
      %c0_23 = arith.constant 0 : index
      %39 = vector.load %arg9[%c0_21, %c0_22, %c0_23] : memref<1x8x32xf32, #tpu.memory_space<vmem>>, vector<1x8x32xf32>
      %40 = vector.shape_cast %39 : vector<1x8x32xf32> to vector<8x32xf32>
      %41 = vector.shape_cast %38 : vector<8x32xf32> to vector<1x8x32xf32>
      tpu.vector_store %arg9[%c0_21, %c0_22, %c0_23], %41 {strides = array<i32>} : memref<1x8x32xf32, #tpu.memory_space<vmem>>, vector<1x8x32xf32>,
    } else {
    }
    return
  }
  func.func @transform_0(%arg0: i32, %arg1: i32, %arg2: i32) -> (i32, i32, i32) {
    %c0_i32 = arith.constant 0 : i32
    %c0_i32_0 = arith.constant 0 : i32
    return %arg0, %arg1, %c0_i32 : i32, i32, i32
  }
  func.func @transform_1(%arg0: i32, %arg1: i32, %arg2: i32) -> (i32, i32, i32) {
    %c0_i32 = arith.constant 0 : i32
    %c0_i32_0 = arith.constant 0 : i32
    return %arg0, %arg2, %c0_i32 : i32, i32, i32
  }
  func.func @transform_2(%arg0: i32, %arg1: i32, %arg2: i32) -> (i32, i32) {
    %c0_i32 = arith.constant 0 : i32
    %c0_i32_0 = arith.constant 0 : i32
    %c0_i32_1 = arith.constant 0 : i32
    return %c0_i32, %c0_i32_0 : i32, i32
  }
  func.func @transform_3(%arg0: i32, %arg1: i32, %arg2: i32) -> (i32, i32) {
    %c0_i32 = arith.constant 0 : i32
    %c0_i32_0 = arith.constant 0 : i32
    %c0_i32_1 = arith.constant 0 : i32
    return %c0_i32, %c0_i32_0 : i32, i32
  }
  func.func @transform_4(%arg0: i32, %arg1: i32, %arg2: i32) -> (i32, i32) {
    %c0_i32 = arith.constant 0 : i32
    %c0_i32_0 = arith.constant 0 : i32
    %c0_i32_1 = arith.constant 0 : i32
    return %c0_i32, %c0_i32_0 : i32, i32
  }
  func.func @transform_5(%arg0: i32, %arg1: i32, %arg2: i32) -> (i32, i32) {
    %c0_i32 = arith.constant 0 : i32
    %c0_i32_0 = arith.constant 0 : i32
    %c0_i32_1 = arith.constant 0 : i32
    return %c0_i32, %c0_i32_0 : i32, i32
  }
  func.func @transform_6(%arg0: i32, %arg1: i32, %arg2: i32) -> (i32, i32, i32) {
    %c0_i32 = arith.constant 0 : i32
    %c0_i32_0 = arith.constant 0 : i32
    return %arg0, %arg1, %c0_i32 : i32, i32, i32
  }
}

</mosaic_0001>

<bundles_post_ra>
// kernel: tpu_custom_call.1
= control target key start
LH: loop header
LB: loop body
LE: loop exit
PB: predicated region body
PF: predicated region fallthrough
CT: control target
= control target key end

     0   :  { %11 = vsyncpa [#allocation6], 0  ;;  %s1187_s0 = inlined_call_operand.vmem [shape: f32[2,8,32], index: 0, kind: input, shape index: {}]   ;;  %s1188_s1 = inlined_call_operand.vmem [shape: f32[2,8,32], index: 1, kind: input, shape index: {}]   ;;  %s1189_s2 = inlined_call_operand.vmem [shape: bf16[32,64], index: 2, kind: input, shape index: {}]   ;;  %s1190_s3 = inlined_call_operand.vmem [shape: f32[1,64], index: 3, kind: input, shape index: {}]   ;;  %s1191_s4 = inlined_call_operand.vmem [shape: bf16[64,32], index: 4, kind: input, shape index: {}]   ;;  %s1192_s5 = inlined_call_operand.vmem [shape: f32[1,32], index: 5, kind: input, shape index: {}]   ;;  %s1193_s6 = inlined_call_operand.hbm [shape: f32[2,8,32], index: 6, kind: output, shape index: {}]  }
   0x1   :  { %13 = vsyncpa [#allocation6 + $0x1], 0  ;;  %s1014_s21 = smov 0   ;;  %s1016_s22 = smov 0  }
   0x2   :  { %s1018_s23 = smov 0   ;;  %s1020_s24 = smov 0  }
   0x3   :  { %s1022_s25 = smov 0   ;;  %s1024_s26 = smov 0  }
   0x4 LB: > { %s753_s27 = sadd.s32 4294967295, %s972_s26   ;;  %s754_s28 = sadd.s32 4294967294, %s972_s26   ;;  %s972_s26 = sphi %s1024_s26, %s19_s26   ;;  %s968_s25 = sphi %s1022_s25, %s1200_s25   ;;  %s964_s24 = sphi %s1020_s24, %s1199_s24   ;;  %s960_s23 = sphi %s1018_s23, %s1198_s23   ;;  %s956_s22 = sphi %s1016_s22, %s1197_s22   ;;  %s952_s21 = sphi %s1014_s21, %s1196_s21  }
   0x5   : > { %s38_s29 = sadd.s32 1, %s968_s25  ;;  %s187_s30 = sadd.s32 1, %s960_s23 }
   0x6   : > { %p40_p0 = scmp.ge.s32.totalorder %s38_s29, 2  ;;  %p197_p1 = scmp.ne.s32.totalorder %s960_s23, %s956_s22 }
   0x7   : > { %p198_p2 = scmp.eq.s32.totalorder %s753_s27, 1  ;;  %p203_p3 = scmp.ne.s32.totalorder %s956_s22, %s952_s21 }
   0x8   : > { %s1202_s29 = smov (%p40_p0, %s38_s29), 0  ;;  %p204_p5 = scmp.eq.s32.totalorder %s754_s28, 1 }
   0x9   : > { %p1054_p4 = por %p198_p2, %p197_p1  ;;  %s182_s8 = ssub.s32 %s968_s25, %s1202_s29 }
   0xa   : > { %p757_p6 = scmp.ge.s32.totalorder %s972_s26, 1  ;;  %p185_p7 = scmp.eq.s32.totalorder %s182_s8, 0 }
   0xb   : > { %p1061_p8 = por %p204_p5, %p203_p3  ;;  %p254_p9 = scmp.lt.s32.totalorder %s972_s26, 3 }
   0xc   : > { %s1067_s10 = scalar_select %p185_p7, %s960_s23, %s187_s30  }
   0xd   : > { %p255_p10 = pnand %p757_p6, %p254_p9 }
   0xe   : > { %p293_p11 = scmp.lt.s32.totalorder (!%p255_p10), %s964_s24, 1  ;;  %s290_s19 = sand.u32 (!%p255_p10), 1, %s956_s22  }
   0xf   : > { %258 = sbr.rel (%p255_p10) target bundleno = 1234 (0x4d2), region = 44  ;;  %s758_s20 = sshll.u32 (!%p255_p10), %s290_s19, 3 }
  0x10   : > { %s774_s30 = sshll.u32 (!%p255_p10), %s964_s24, 7  ;;  %s292_s8 = scalar_lea.vmem (!%p255_p10), [#allocation5], %s758_s20 }
  0x11   : > { %s1140_s14 = scalar_lea.hbm (!%p255_p10), %s1193_s6, %s774_s30  ;;  %s978_s16 = smov (!%p255_p10), [#allocation5]  }
  0x12   : > { %s900_s17 = sshll.u32 (!%p255_p10), %s978_s16, 4  ;;  %s901_s17 = int_to_ptr.vmem [resolvable:$false] %s900_s17 }
  0x14   : > { %vm317_vm0 = vcmask 261120   ;;  %v974_v0 = vmov 0.0   ;;  %vm975_vm1 = vmmov 0   ;;  %s294_s11 = scalar_select %p293_p11, %s964_s24, 1  ;;  %vm314_vm2 = vcmask 7168   ;;  %v882_v31 = vld [vmem:[%s1189_s2 + $0x8] sm:$0xff]  }
  0x15   : > { %789 = vmatprep.subr.bf16.mxu0 %v974_v0  ;;  %318 = vst.msk [vmem:[#allocation4] sm:$0xff] %vm317_vm0, %v974_v0  ;;  %791 = vmatprep.mubr.msk.bf16.mxu0 %vm975_vm1, %v974_v0  ;;  %v976_v7 = vmov -inf   ;;  %v378_v8 = vlaneseq  ;;  %vm393_vm4 = vcmask 64512   ;;  %v977_v17 = vmov 0   ;;  %v883_v40 = vld [vmem:[%s1189_s2] sm:$0xff]   ;;  %v884_v55 = vld [vmem:[%s1191_s4 + $0x18] sm:$0xff]  }
  0x16   : > { %795 = vmatprep.subr.bf16.mxu1 %v974_v0  ;;  %797 = vmatprep.mubr.msk.bf16.mxu1 %vm975_vm1, %v974_v0  ;;  %s759_s12 = sshll.u32 %s294_s11, 3  ;;  %315 = vst.msk [vmem:[#allocation2] sm:$0xff] %vm314_vm2, %v976_v7  ;;  %316 = vst.msk [vmem:[#allocation3] sm:$0xff] %vm314_vm2, %v974_v0  ;;  %vm430_vm5 = vcmask 1043456   ;;  %v885_v56 = vld [vmem:[%s1191_s4 + $0x10] sm:$0xff]   ;;  %v886_v57 = vld [vmem:[%s1191_s4 + $0x8] sm:$0xff]  }
  0x17   : > { %s299_s15 = scalar_lea.vmem %s1187_s0, %s759_s12  ;;  %s306_s18 = scalar_lea.vmem %s1188_s1, %s759_s12  ;;  %v379_v9 = vshrl.u32 %v378_v8, 7  ;;  %v383_v10 = vand.u32 127, %v378_v8  ;;  %880 = vset.pattern.permute.xlu0 %v977_v17  ;;  %881 = vset.pattern.permute.xlu1 %v977_v17  ;;  %v887_v58 = vld [vmem:[%s1191_s4] sm:$0xff]   ;;  %vm603_vm6 = vcmask 523264  }
  0x18   : > { %v1085_v1 = vld [vmem:[%s299_s15] sm:$0xff]  ;;  %s664_s11 = sshll.u32 %s292_s8, 4  ;;  %s650_s24 = scalar_lea.sflag [#allocation6], %s290_s19  ;;  %s1142_s11 = int_to_ptr.vmem [resolvable:$true] %s664_s11 }
  0x19   : > { %v327_v2 = vld [vmem:[%s306_s18] sm:$0xff]  ;;  %v325_v4 = vmul.f32 0.17677669, %v1085_v1  ;;  %vm386_vm3 = vcmp.le.s32.totalorder %v383_v10, %v379_v9  ;;  %s896_s15 = scalar_lea.vmem %s1142_s11, 128  ;;  %s902_s18 = scalar_lea.vmem %s901_s17, 256 }
  0x1a   : > { %v328_v3 = vpack.c.bf16 %v327_v2, %v327_v2  ;;  %v763_v59 = vld [vmem:[%s1190_s3] ss:$0 sm:$0xff]  ;;  %p897_p12 = scmp.ne.s32.totalorder %s1142_s11, %s896_s15  ;;  %p903_p1 = scmp.lt.s32.totalorder %s1142_s11, %s901_s17 }
  0x1b   : > { %v326_v6 = vpack.c.bf16 %v325_v4, %v325_v4  ;;  %p904_p2 = scmp.lt.s32.totalorder %s902_s18, %s896_s15 }
  0x1c   : > { %v334_v5 = vsel %vm317_vm0, %v328_v3, 0  ;;  %v432_v22 = vsel %vm430_vm5, %v328_v3, 0  ;;  %v417_v42 = vld [vmem:[#allocation4] sm:$0xff]  ;;  %p898_p13 = pnand %p897_p12, %p1054_p4 }
  0x1d   : > { %790 = vmatpush3.bf16.xpose.msra.mxu0 %v334_v5  ;;  %v392_v18 = vld [vmem:[#allocation2] sm:$0xff]  ;;  %796 = vmatpush3.bf16.msra.mxu1 %v432_v22  ;;  %v409_v32 = vld [vmem:[#allocation3] sm:$0xff]  ;;  %p905_p3 = por %p904_p2, %p903_p1 }
  0x1e   : > { %809 = vmatprep.subr.bf16.mxu0 %v974_v0  ;;  %801 = vmatprep.subr.bf16.mxu1 %v974_v0  ;;  %p899_p0 = pneg %p898_p13 }
  0x20   : > { %p906_p5 = pnand %p905_p3, %p899_p0 }
  0x24   : > { %792 = vmatmul.mubr.msk.bf16.vlgmr.msra.gmra.mxu0 %vm317_vm0, %v326_v6 }
  0x25   : > { %817 = vmatprep.mubr.msk.bf16.mxu0 %vm975_vm1, %v974_v0  ;;  %810 = vmatpush3.bf16.msra.mxu0 %v884_v55 }
  0x26   : > { %811 = vmatprep.subr.bf16.mxu0 %v974_v0 }
  0x29   : > { %812 = vmatpush3.bf16.msra.mxu0 %v885_v56 }
  0x2a   : > { %813 = vmatprep.subr.bf16.mxu0 %v974_v0 }
  0x2d   : > { %814 = vmatpush3.bf16.msra.mxu0 %v886_v57 }
  0x2e   : > { %815 = vmatprep.subr.bf16.mxu0 %v974_v0 }
  0x31   : > { %816 = vmatpush3.bf16.msra.mxu0 %v887_v58 }
  0xe4   : > { %v370_v11 = vpop.f32.mrf.mxu0 }
  0xe5   : > { %v391_v12 = vsel %vm386_vm3, %v370_v11, -1e+30 }
  0xe6   : > { %v793_v13 = vpop.f32.mrf.mxu0  ;;  %v394_v14 = vsel %vm393_vm4, %v391_v12, -inf }
  0xe7   : > { %395 = vmax.xlane.f32.xlu0 %v394_v14 }
  0xe8   : > { %v373_v15 = vpop.f32.mrf.mxu0 }
  0xea   : > { %v794_v16 = vpop.f32.mrf.mxu0 }
 0x170   : > { %v396_v19 = vpop.xlane.xlu0 %395 }
 0x171   : > { %v397_v20 = vmax.f32 %v392_v18, %v396_v19 }
 0x173   : > { %v398_v21 = vsub.f32 %v392_v18, %v397_v20  ;;  %476 = vst.msk [vmem:[#allocation2] sm:$0xff] %vm314_vm2, %v397_v20  ;;  %403 = vperm.xlu0 %880, %v397_v20  }
 0x175   : > { %v399_v27 = vmul.f32 1.442695, %v398_v21 }
 0x1ee   : > { %v404_v23 = vpop.permute.xlu0 %403 }
 0x1ef   : > { %v406_v24 = vsub.f32 %v391_v12, %v404_v23 }
 0x1f1   : > { %v407_v25 = vmul.f32 1.442695, %v406_v24 }
 0x1f3   : > { %888 = vpow2.f32 %v407_v25 }
 0x1f4   : > { %890 = vpow2.f32 %v399_v27 }
 0x200   : > { %v889_v26 = vpop.eup %888 }
 0x201   : > { %v411_v28 = vsel %vm393_vm4, %v889_v26, 0.0  ;;  %v424_v29 = vpack.c.bf16 %v889_v26, %v889_v26  ;;  %v891_v30 = vpop.eup %890 }
 0x202   : > { %412 = vadd.xlane.f32.xlu1 %v411_v28  ;;  %v410_v33 = vmul.f32 %v891_v30, %v409_v32 }
 0x203   : > { %798 = vmatmul.mubr.msk.bf16.vlgmr.msra.gmra.mxu1 %vm393_vm4, %v424_v29 }
 0x204   : > { %805 = vmatprep.mubr.msk.bf16.mxu1 %vm975_vm1, %v974_v0  ;;  %802 = vmatpush3.bf16.msra.mxu1 %v882_v31 }
 0x205   : > { %803 = vmatprep.subr.bf16.mxu1 %v974_v0  ;;  %v767_v0 = vld [vmem:[%s1192_s5] ss:$0 sm:$0xff] }
 0x208   : > { %804 = vmatpush3.bf16.msra.mxu1 %v883_v40 }
 0x213   : > { %420 = vperm.xlu1 %881, %v891_v30  }
 0x28b   : > { %v413_v34 = vpop.xlane.xlu1 %412 }
 0x28c   : > { %v414_v35 = vadd.f32 %v413_v34, %v410_v33 }
 0x28e   : > { %416 = vst.msk [vmem:[#allocation3] sm:$0xff] %vm314_vm2, %v414_v35 }
 0x28f   : > { %v421_v43 = vpop.permute.xlu1 %420 }
 0x290   : > { %v423_v44 = vmul.f32 %v421_v43, %v417_v42 }
 0x295   : > { %v481_v36 = vld [vmem:[#allocation3] sm:$0xff] }
 0x296   : > { %892 = vrcp.f32 %v481_v36 }
 0x2a3   : > { %v893_v37 = vpop.eup %892 }
 0x2a4   : > { %v483_v38 = vmul.f32 %v893_v37, %v481_v36 }
 0x2a6   : > { %v484_v39 = vsub.f32 2.0, %v483_v38 }
 0x2a8   : > { %v485_v41 = vmul.f32 %v893_v37, %v484_v39 }
 0x2aa   : > { %489 = vperm.xlu1 %881, %v485_v41  }
 0x2c3   : > { %v468_v45 = vpop.f32.mrf.mxu1 }
 0x2c4   : > { %v474_v46 = vadd.f32 %v468_v45, %v423_v44 }
 0x2c5   : > { %v799_v47 = vpop.f32.mrf.mxu1 }
 0x2c6   : > { %475 = vst.msk [vmem:[#allocation4] sm:$0xff] %vm317_vm0, %v474_v46 }
 0x2c7   : > { %v471_v48 = vpop.f32.mrf.mxu1 }
 0x2c9   : > { %v800_v49 = vpop.f32.mrf.mxu1 }
 0x2cd   : > { %v486_v50 = vld [vmem:[#allocation4] sm:$0xff] }
 0x325   : > { %v490_v51 = vpop.permute.xlu1 %489 }
 0x326   : > { %v492_v52 = vmul.f32 %v490_v51, %v486_v50 }
 0x328   : > { %v493_v53 = vadd.f32 %v492_v52, %v1085_v1 }
 0x32a   : > { %v494_v54 = vpack.c.bf16 %v493_v53, %v493_v53 }
 0x32c   : > { %806 = vmatmul.mubr.msk.bf16.vlgmr.msra.gmra.mxu1 %vm317_vm0, %v494_v54 }
 0x3ec   : > { %v556_v60 = vpop.f32.mrf.mxu1 }
 0x3ed   : > { %v557_v61 = vadd.f32 %v763_v59, %v556_v60 }
 0x3ee   : > { %v807_v62 = vpop.f32.mrf.mxu1 }
 0x3ef   : > { %894 = vtanh.f32 %v557_v61 }
 0x3f0   : > { %v559_v63 = vpop.f32.mrf.mxu1 }
 0x3f2   : > { %v808_v1 = vpop.f32.mrf.mxu1 }
 0x3fc   : > { %v895_v2 = vpop.eup %894 }
 0x3fd   : > { %v563_v3 = vpack.c.bf16 %v895_v2, %v895_v2 }
 0x3ff   : > { %818 = vmatmul.mubr.msk.bf16.vlgmr.msra.gmra.mxu0 %vm603_vm6, %v563_v3 }
 0x4bf   : > { %v641_v4 = vpop.f32.mrf.mxu0 }
 0x4c0   : > { %v642_v5 = vadd.f32 %v767_v0, %v641_v4 }
 0x4c1   : > { %v819_v6 = vpop.f32.mrf.mxu0 }
 0x4c2   : > { %v647_v7 = vadd.f32 %v642_v5, %v493_v53 }
 0x4c3   : > { %v644_v8 = vpop.f32.mrf.mxu0 }
 0x4c4   : > { %648 = vst.msk [vmem:[%s292_s8] sm:$0xff] %vm317_vm0, %v647_v7 }
 0x4c5   : > { %v820_v9 = vpop.f32.mrf.mxu0 }
 0x4c6   : > { %909 = shalt.err (!%p906_p5)
}
 0x4c7   : > { %s910_s20 = scalar_lea.hbm %s1140_s14, 128  ;;  %s914_s28 = scalar_lea.hbm %s1193_s6, 256 }
 0x4c8   : > { %p911_p6 = scmp.ne.s32.totalorder %s1140_s14, %s910_s20  ;;  %p915_p10 = scmp.lt.s32.totalorder %s1140_s14, %s1193_s6 }
 0x4c9   : > { %p916_p11 = scmp.lt.s32.totalorder %s914_s28, %s910_s20 }
 0x4ca   : > { %p912_p7 = pnand %p911_p6, %p1054_p4 }
 0x4cb   : > { %p917_p12 = por %p916_p11, %p915_p10 }
 0x4cc   : > { %p913_p9 = pneg %p912_p7 }
 0x4ce   : > { %p918_p13 = pnand %p917_p12, %p913_p9 }
 0x4d0   : > { %921 = shalt.err (!%p918_p13)
}
 0x4d1   : > { %821 = dma.vmem_to_hbm [thread:$0]  (%p1054_p4), %s1142_s11, 128, %s1140_s14, %s650_s24  }
 0x4d2 PF: > { %p827_p0 = scmp.ge.s32.totalorder %s972_s26, 2  ;;  %s676_s12 = sand.u32 1, %s952_s21  }
 0x4d3   : > { %s677_s13 = scalar_lea.sflag [#allocation6], %s676_s12 }
 0x4d4   : > { %p824_p1 = pnand %p827_p0, %p1061_p8 }
 0x4d6   : > { %p825_p2 = pneg %p824_p1 }
 0x4d8   : > { %947 = dma.done.wait (%p825_p2), %s677_s13, 128  }
 0x4d9   : > { %949 = vsyncadd (%p825_p2), %s677_s13, 4294967168  ;;  %s19_s26 = sadd.s32 1, %s972_s26   ;;  %s1196_s21 = smov %s956_s22 }
 0x4da   : > { %p16_p3 = scmp.ge.s32.totalorder %s19_s26, 4   ;;  %s1197_s22 = smov %s960_s23 }
 0x4db   : > { %s1198_s23 = smov %s1067_s10  ;;  %s1199_s24 = smov %s968_s25 }
 0x4dc   : > { %s1200_s25 = smov %s1202_s29  ;;  %18 = sbr.rel (!%p16_p3) target bundleno = 4 (0x4), region = 94 }
 0x4e1   :  { %682 = vsyncpa [#allocation6], 1 }
 0x4e2   :  { %684 = vsyncpa [#allocation6 + $0x1], 1 }

</bundles_post_ra>
